<compile_context>
chip_gen: v7x
topology: tpu7x:2x2x1
jax: 0.10.0
libtpu: 0.0.40
codegen_flags: <defaults>
</compile_context>

<pallas_src>
import functools
import math

import jax
import jax.numpy as jnp
from jax import lax
from jax.experimental import pallas as pl
from jax.experimental.pallas import tpu as pltpu

INPLANES = 16
PLANES = 16
KERNEL_SIZE = 5
PAD = KERNEL_SIZE // 2
SCALE = 4
BASE_WIDTH = 26
WIDTH = int(PLANES * (BASE_WIDTH / 64.0))        # 6
NB_BRANCHES = max(SCALE, 2) - 1                  # 3
WP = 8                                           # sublane-aligned chunk width
CPAD = SCALE * WP                                # 32 padded conv1 channels
BR = NB_BRANCHES * WP                            # 24 padded branch rows
KIM = KERNEL_SIZE * BR + 1                       # 121 im2col rows (+1 bias row)
EPS = 1e-5
VMEM_LIMIT_BYTES = 32 * 1024 * 1024              # safe on v5e/v6e/v7x


def _max_block_cols():
    """Per-chip lane-width cap (perf review: ~4K on v5e, ~8K on v6e/v7x)."""
    try:
        kind = jax.devices()[0].device_kind.lower()
    except Exception:
        kind = ""
    if "v5e" in kind or "v5 lite" in kind or "v5lite" in kind:
        return 4096
    return 8192


def _mish(x):
    # mish(x) = x*tanh(softplus(x)) = x*(e^2 + 2e)/(e^2 + 2e + 2), e = exp(x).
    # Clamp at 20: the ratio is 1.0 in f32 beyond that and exp() stays finite.
    # Approx reciprocal only (EUP); Newton step dropped per perf review.
    e = jnp.exp(jnp.minimum(x, 20.0))
    n = e * (e + 2.0)
    return x * n * pl.reciprocal(n + 2.0, approx=True)


def _res2block_kernel(x_ref, w1_ref, bn1s_ref, bn1b_ref, wbig_ref,
                      w3a_ref, w3b_ref, bn3b_ref, o_ref, *, seq_len):
    bf16 = jnp.bfloat16
    x = x_ref[...]                                   # (INPLANES, N) f32, lane-dense
    N = x.shape[-1]

    # Column position inside its length-`seq_len` sequence, plus the four
    # boundary masks (s = +-1, +-2) hoisted once per block (one compare each);
    # reused by both the branch-conv taps and the avg-pool shifts.
    lane = lax.broadcasted_iota(jnp.int32, (1, N), 1)
    if seq_len & (seq_len - 1) == 0:
        pos = lane & (seq_len - 1)
    else:
        pos = lane % seq_len
    masks = {1: pos < seq_len - 1, 2: pos < seq_len - 2,
             -1: pos >= 1, -2: pos >= 2}

    def shift(v, s):
        """v shifted by s along the sequence axis, zero outside each sequence."""
        if s == 0:
            return v
        rolled = pltpu.roll(v, shift=(-s) % N, axis=1)   # rolled[:, j] = v[:, j+s]
        return jnp.where(masks[s], rolled, 0.0)

    # conv1 (1x1, bf16 MXU operands, f32 accumulate) -> Mish -> BN1
    # (BN1 not foldable into conv1: Mish sits in between.)
    h = jnp.dot(w1_ref[...], x.astype(bf16),
                preferred_element_type=jnp.float32)              # (CPAD, N) f32
    h = _mish(h) * bn1s_ref[...] + bn1b_ref[...]

    hb = h[:BR]          # branch chunks (8-row aligned)          (24, N)
    hl = h[BR:]          # last chunk -> pooled path               ( 8, N)

    # im2col: 5 boundary-masked shifts + a constant-1 row (carries the folded
    # branch BN bias), then ONE bf16 MXU dot covering all three k=5 branch convs
    # (per-branch BN scale folded into wbig).
    him = jnp.concatenate([shift(hb, t - PAD) for t in range(KERNEL_SIZE)]
                          + [jnp.ones((1, N), jnp.float32)], axis=0)  # (121, N)
    br = jnp.dot(wbig_ref[...], him.astype(bf16),
                 preferred_element_type=jnp.float32)              # (24, N) f32
    br = _mish(br)

    # AvgPool1d(kernel=3, stride=1, pad=1, count_include_pad=True), last chunk.
    pooled = (shift(hl, -1) + hl + shift(hl, 1)) * (1.0 / 3.0)    # (8, N)

    # conv3 as two column slabs (branches | pooled), BN3 scale folded into the
    # weights, then BN3 bias + identity shortcut + Mish.
    o = jnp.dot(w3a_ref[...], br.astype(bf16),
                preferred_element_type=jnp.float32)
    o = o + jnp.dot(w3b_ref[...], pooled.astype(bf16),
                    preferred_element_type=jnp.float32)
    o = _mish(o + bn3b_ref[...] + x)
    o_ref[...] = o.astype(o_ref.dtype)


def _pack_params(params):
    """Fold BN scales into conv weights, zero-pad every Res2Net chunk from
    WIDTH=6 to WP=8 rows (sublane-aligned chunk slices), fold the branch BN
    bias into a bias column of the im2col weight, and cast all MXU weights to
    bf16.  One-time glue: would be done at model-load time in practice."""
    w1, bn1s, bn1b, wconv, bnss, bnsb, w3, bn3s, bn3b = params
    f32 = jnp.float32
    bf16 = jnp.bfloat16

    # conv1 weight + BN1 vectors (chunk-padded)
    w1p = jnp.zeros((CPAD, INPLANES), f32)
    bn1s_p = jnp.ones((CPAD,), f32)
    bn1b_p = jnp.zeros((CPAD,), f32)
    for i in range(SCALE):
        src = slice(i * WIDTH, (i + 1) * WIDTH)
        dst = slice(i * WP, i * WP + WIDTH)
        w1p = w1p.at[dst].set(w1[src])
        bn1s_p = bn1s_p.at[dst].set(bn1s[src])
        bn1b_p = bn1b_p.at[dst].set(bn1b[src])

    # Block-structured im2col weight for all branch convs, BN scale folded,
    # plus a last column holding the branch BN bias (multiplied by the
    # constant-1 row appended to the im2col activations in-kernel).
    wbig = jnp.zeros((BR, KIM), f32)
    for i in range(NB_BRANCHES):
        rows = slice(i * WP, i * WP + WIDTH)
        wbig = wbig.at[rows, KERNEL_SIZE * BR].set(bnsb[i])
        for t in range(KERNEL_SIZE):
            cols = slice(t * BR + i * WP, t * BR + i * WP + WIDTH)
            wbig = wbig.at[rows, cols].set(bnss[i][:, None] * wconv[i, :, :, t])

    # conv3 split into (branches | pooled) column slabs, BN3 scale folded.
    w3s = bn3s[:, None] * w3                                 # (PLANES, 24)
    w3a = jnp.zeros((PLANES, BR), f32)
    for i in range(NB_BRANCHES):
        w3a = w3a.at[:, i * WP:i * WP + WIDTH].set(
            w3s[:, i * WIDTH:(i + 1) * WIDTH])
    w3b = jnp.zeros((PLANES, WP), f32)
    w3b = w3b.at[:, :WIDTH].set(w3s[:, NB_BRANCHES * WIDTH:])

    return (w1p.astype(bf16), bn1s_p[:, None], bn1b_p[:, None],
            wbig.astype(bf16), w3a.astype(bf16), w3b.astype(bf16),
            bn3b[:, None])


def _pick_block_cols(total_cols, seq_len, max_block_cols):
    """Pick (block_cols, padded_total_cols).  block_cols is a multiple of both
    128 (unmasked lane-dense stores) and seq_len (valid per-sequence masks);
    total is padded up so the grid divides evenly.  Prefer an even grid of
    >= 4 steps (v7x dual TensorCore + per-core pipelining), then >= 2 steps,
    then the widest block."""
    unit = 128 * seq_len // math.gcd(128, seq_len)           # lcm(128, seq_len)
    padded = ((total_cols + unit - 1) // unit) * unit
    max_w = max(unit, (max_block_cols // unit) * unit)        # at least one unit
    cap = min(padded, max_w)
    cands = [w for w in range(unit, cap + 1, unit) if padded % w == 0]

    def rank(w):
        steps = padded // w
        return (steps >= 4 and steps % 2 == 0, steps >= 2, w)

    return max(cands, key=rank), padded


def res2block_forward(x, params):
    B, C, L = x.shape
    assert C == INPLANES
    packed = _pack_params(params)

    total = B * L
    # lane-dense layout: channels on sublanes, batch*sequence on lanes
    x2 = jnp.transpose(x, (1, 0, 2)).reshape(C, total)
    wcols, padded = _pick_block_cols(total, L, _max_block_cols())
    if padded != total:
        # pad with whole zero sequences; per-sequence masks keep them isolated
        x2 = jnp.pad(x2, ((0, 0), (0, padded - total)))
    grid = (padded // wcols,)

    out2 = pl.pallas_call(
        functools.partial(_res2block_kernel, seq_len=L),
        out_shape=jax.ShapeDtypeStruct((PLANES, padded), x.dtype),
        grid=grid,
        in_specs=[pl.BlockSpec((C, wcols), lambda g: (0, g))]
                 + [pl.BlockSpec(p.shape, lambda g: (0, 0)) for p in packed],
        out_specs=pl.BlockSpec((PLANES, wcols), lambda g: (0, g)),
        compiler_params=pltpu.CompilerParams(
            dimension_semantics=("parallel",),
            vmem_limit_bytes=VMEM_LIMIT_BYTES),
    )(x2, *packed)

    return jnp.transpose(out2[:, :total].reshape(PLANES, B, L), (1, 0, 2))


# --------------------------- reference & test -------------------------------

def _mish_ref(x):
    sp = jnp.maximum(x, 0.0) + jnp.log1p(jnp.exp(-jnp.abs(x)))
    return x * jnp.tanh(sp)


def reference(x, params):
    # pure-JAX f32 reference of the same forward pass (faithful to the module)
    w1, bn1s, bn1b, wconv, bnss, bnsb, w3, bn3s, bn3b = params
    B, _, L = x.shape
    h = jnp.einsum('oi,bil->bol', w1, x)
    h = _mish_ref(h)
    h = h * bn1s[None, :, None] + bn1b[None, :, None]
    outs = []
    for idx in range(NB_BRANCHES):
        y = h[:, idx * WIDTH:(idx + 1) * WIDTH, :]
        yp = jnp.pad(y, ((0, 0), (0, 0), (PAD, PAD)))
        acc = jnp.zeros((B, WIDTH, L), jnp.float32)
        for t in range(KERNEL_SIZE):
            acc = acc + jnp.einsum('oi,bil->bol', wconv[idx, :, :, t],
                                   yp[:, :, t:t + L])
        yb = acc * bnss[idx][None, :, None] + bnsb[idx][None, :, None]
        outs.append(_mish_ref(yb))
    y_last = h[:, NB_BRANCHES * WIDTH:, :]
    ylp = jnp.pad(y_last, ((0, 0), (0, 0), (1, 1)))
    pooled = (ylp[:, :, 0:L] + ylp[:, :, 1:1 + L] + ylp[:, :, 2:2 + L]) / 3.0
    cat = jnp.concatenate(outs + [pooled], axis=1)
    o = jnp.einsum('oi,bil->bol', w3, cat)
    o = o * bn3s[None, :, None] + bn3b[None, :, None]
    o = o + x
    return _mish_ref(o)


def init_params(key):
    ks = jax.random.split(key, 6)

    def bn_params(k, c):
        k1, k2, k3, k4 = jax.random.split(k, 4)
        gamma = 1.0 + 0.1 * jax.random.normal(k1, (c,), jnp.float32)
        beta = 0.1 * jax.random.normal(k2, (c,), jnp.float32)
        mean = 0.1 * jax.random.normal(k3, (c,), jnp.float32)
        var = jax.random.uniform(k4, (c,), jnp.float32, minval=0.5, maxval=1.5)
        scale = gamma / jnp.sqrt(var + EPS)
        bias = beta - mean * scale
        return scale, bias

    ws = WIDTH * SCALE
    w1 = 0.2 * jax.random.normal(ks[0], (ws, INPLANES), jnp.float32)
    bn1s, bn1b = bn_params(ks[1], ws)
    wconv = 0.2 * jax.random.normal(
        ks[2], (NB_BRANCHES, WIDTH, WIDTH, KERNEL_SIZE), jnp.float32)
    bns = [bn_params(k, WIDTH) for k in jax.random.split(ks[3], NB_BRANCHES)]
    bnss = jnp.stack([s for s, _ in bns])
    bnsb = jnp.stack([b for _, b in bns])
    w3 = 0.2 * jax.random.normal(ks[4], (PLANES, ws), jnp.float32)
    bn3s, bn3b = bn_params(ks[5], PLANES)
    return (w1, bn1s, bn1b, wconv, bnss, bnsb, w3, bn3s, bn3b)


if __name__ == "__main__":
    key = jax.random.PRNGKey(0)
    kx, kp, kx2 = jax.random.split(key, 3)
    params = init_params(kp)
    fwd = jax.jit(res2block_forward)

    # bf16 MXU operands -> tolerance vs the f32 reference is bf16-grade.
    RTOL = ATOL = 3e-2

    # Case 1: clean tiling -> 128-wide lane-dense blocks, even 4-step grid.
    B, L = 16, 32
    x = jax.random.normal(kx, (B, INPLANES, L), jnp.float32)
    out = jax.block_until_ready(fwd(x, params))
    assert out.shape == (B, PLANES, L)
    assert bool(jnp.all(jnp.isfinite(out)))
    ref = reference(x, params)
    assert bool(jnp.allclose(out, ref, rtol=RTOL, atol=ATOL)), \
        float(jnp.max(jnp.abs(out - ref)))

    # Case 2: awkward B*L -> wrapper pads columns up to lcm(128, L)=384.
    B2, L2 = 5, 48
    x2 = jax.random.normal(kx2, (B2, INPLANES, L2), jnp.float32)
    out2 = jax.block_until_ready(fwd(x2, params))
    assert out2.shape == (B2, PLANES, L2)
    assert bool(jnp.all(jnp.isfinite(out2)))
    ref2 = reference(x2, params)
    assert bool(jnp.allclose(out2, ref2, rtol=RTOL, atol=ATOL)), \
        float(jnp.max(jnp.abs(out2 - ref2)))

    print("KERNEL_OK")
</pallas_src>

<mosaic_0001>
module attributes {stable_mosaic.version = 11 : i64} {
  func.func @_res2block_kernel(%arg0: i32, %arg1: memref<16x128xf32, #tpu.memory_space<vmem>>, %arg2: memref<32x16xbf16, #tpu.memory_space<vmem>>, %arg3: memref<32x1xf32, #tpu.memory_space<vmem>>, %arg4: memref<32x1xf32, #tpu.memory_space<vmem>>, %arg5: memref<24x121xbf16, #tpu.memory_space<vmem>>, %arg6: memref<16x24xbf16, #tpu.memory_space<vmem>>, %arg7: memref<16x8xbf16, #tpu.memory_space<vmem>>, %arg8: memref<16x1xf32, #tpu.memory_space<vmem>>, %arg9: memref<16x128xf32, #tpu.memory_space<vmem>>) attributes {dimension_semantics = [#tpu.dimension_semantics<parallel>], iteration_bounds = array<i64: 4>, scalar_prefetch = 0 : i64, scratch_operands = 0 : i64, tpu.core_type = #tpu.core_type<tc>, window_params = [{transform_indices = @transform_0, window_bounds = array<i64: 16, 128>}, {pipeline_mode = #tpu.pipeline_mode<synchronous>, transform_indices = @transform_1, window_bounds = array<i64: 32, 16>}, {pipeline_mode = #tpu.pipeline_mode<synchronous>, transform_indices = @transform_2, window_bounds = array<i64: 32, 1>}, {pipeline_mode = #tpu.pipeline_mode<synchronous>, transform_indices = @transform_3, window_bounds = array<i64: 32, 1>}, {pipeline_mode = #tpu.pipeline_mode<synchronous>, transform_indices = @transform_4, window_bounds = array<i64: 24, 121>}, {pipeline_mode = #tpu.pipeline_mode<synchronous>, transform_indices = @transform_5, window_bounds = array<i64: 16, 24>}, {pipeline_mode = #tpu.pipeline_mode<synchronous>, transform_indices = @transform_6, window_bounds = array<i64: 16, 8>}, {pipeline_mode = #tpu.pipeline_mode<synchronous>, transform_indices = @transform_7, window_bounds = array<i64: 16, 1>}, {transform_indices = @transform_8, window_bounds = array<i64: 16, 128>}]} {
    %c0 = arith.constant 0 : index
    %c0_0 = arith.constant 0 : index
    %0 = vector.load %arg1[%c0, %c0_0] : memref<16x128xf32, #tpu.memory_space<vmem>>, vector<16x128xf32>
    %1 = tpu.iota {dimensions = array<i32: 1>} : vector<1x128xi32>
    %c31_i32 = arith.constant 31 : i32
    %2 = vector.broadcast %c31_i32 : i32 to vector<1x128xi32>
    %3 = arith.andi %1, %2 : vector<1x128xi32>
    %c31_i32_1 = arith.constant 31 : i32
    %4 = vector.broadcast %c31_i32_1 : i32 to vector<1x128xi32>
    %5 = arith.cmpi slt, %3, %4 : vector<1x128xi32>
    %c30_i32 = arith.constant 30 : i32
    %6 = vector.broadcast %c30_i32 : i32 to vector<1x128xi32>
    %7 = arith.cmpi slt, %3, %6 : vector<1x128xi32>
    %c1_i32 = arith.constant 1 : i32
    %8 = vector.broadcast %c1_i32 : i32 to vector<1x128xi32>
    %9 = arith.cmpi sge, %3, %8 : vector<1x128xi32>
    %c2_i32 = arith.constant 2 : i32
    %10 = vector.broadcast %c2_i32 : i32 to vector<1x128xi32>
    %11 = arith.cmpi sge, %3, %10 : vector<1x128xi32>
    %c0_2 = arith.constant 0 : index
    %c0_3 = arith.constant 0 : index
    %12 = vector.load %arg2[%c0_2, %c0_3] : memref<32x16xbf16, #tpu.memory_space<vmem>>, vector<32x16xbf16>
    %13 = arith.truncf %0 : vector<16x128xf32> to vector<16x128xbf16>
    %cst = arith.constant dense<0.000000e+00> : vector<32x128xf32>
    %14 = tpu.matmul %12, %13, %cst {dimension_numbers = #tpu.dot_dimension_numbers<[1], [0], [0], [1], [0, 0, 1, 1], [], []>} : vector<32x16xbf16>, vector<16x128xbf16>, vector<32x128xf32> -> vector<32x128xf32>
    %cst_4 = arith.constant 2.000000e+01 : f32
    %15 = vector.broadcast %cst_4 : f32 to vector<32x128xf32>
    %16 = arith.minimumf %14, %15 : vector<32x128xf32>
    %17 = math.exp %16 : vector<32x128xf32>
    %cst_5 = arith.constant 2.000000e+00 : f32
    %18 = vector.broadcast %cst_5 : f32 to vector<32x128xf32>
    %19 = arith.addf %17, %18 : vector<32x128xf32>
    %20 = arith.mulf %17, %19 : vector<32x128xf32>
    %21 = arith.mulf %14, %20 : vector<32x128xf32>
    %cst_6 = arith.constant 2.000000e+00 : f32
    %22 = vector.broadcast %cst_6 : f32 to vector<32x128xf32>
    %23 = arith.addf %20, %22 : vector<32x128xf32>
    %24 = tpu.reciprocal %23 {approx = true} : vector<32x128xf32> -> vector<32x128xf32>
    %25 = arith.mulf %21, %24 : vector<32x128xf32>
    %c0_7 = arith.constant 0 : index
    %c0_8 = arith.constant 0 : index
    %26 = vector.load %arg3[%c0_7, %c0_8] : memref<32x1xf32, #tpu.memory_space<vmem>>, vector<32x1xf32>
    %27 = vector.broadcast %26 : vector<32x1xf32> to vector<32x128xf32>
    %28 = arith.mulf %25, %27 : vector<32x128xf32>
    %c0_9 = arith.constant 0 : index
    %c0_10 = arith.constant 0 : index
    %29 = vector.load %arg4[%c0_9, %c0_10] : memref<32x1xf32, #tpu.memory_space<vmem>>, vector<32x1xf32>
    %30 = vector.broadcast %29 : vector<32x1xf32> to vector<32x128xf32>
    %31 = arith.addf %28, %30 : vector<32x128xf32>
    %32 = vector.extract_strided_slice %31 {offsets = [0, 0], sizes = [24, 128], strides = [1, 1]} : vector<32x128xf32> to vector<24x128xf32>
    %33 = vector.extract_strided_slice %31 {offsets = [24, 0], sizes = [8, 128], strides = [1, 1]} : vector<32x128xf32> to vector<8x128xf32>
    %c2_i32_11 = arith.constant 2 : i32
    %34 = tpu.dynamic_rotate %32 by %c2_i32_11 dim 1 : vector<24x128xf32>, i32 -> vector<24x128xf32>
    %cst_12 = arith.constant 0.000000e+00 : f32
    %35 = vector.shape_cast %11 : vector<1x128xi1> to vector<1x128xi1>
    %36 = vector.broadcast %35 : vector<1x128xi1> to vector<24x128xi1>
    %37 = vector.broadcast %cst_12 : f32 to vector<24x128xf32>
    %38 = arith.select %36, %34, %37 : vector<24x128xi1>, vector<24x128xf32>
    %c1_i32_13 = arith.constant 1 : i32
    %39 = tpu.dynamic_rotate %32 by %c1_i32_13 dim 1 : vector<24x128xf32>, i32 -> vector<24x128xf32>
    %cst_14 = arith.constant 0.000000e+00 : f32
    %40 = vector.shape_cast %9 : vector<1x128xi1> to vector<1x128xi1>
    %41 = vector.broadcast %40 : vector<1x128xi1> to vector<24x128xi1>
    %42 = vector.broadcast %cst_14 : f32 to vector<24x128xf32>
    %43 = arith.select %41, %39, %42 : vector<24x128xi1>, vector<24x128xf32>
    %c127_i32 = arith.constant 127 : i32
    %44 = tpu.dynamic_rotate %32 by %c127_i32 dim 1 : vector<24x128xf32>, i32 -> vector<24x128xf32>
    %cst_15 = arith.constant 0.000000e+00 : f32
    %45 = vector.shape_cast %5 : vector<1x128xi1> to vector<1x128xi1>
    %46 = vector.broadcast %45 : vector<1x128xi1> to vector<24x128xi1>
    %47 = vector.broadcast %cst_15 : f32 to vector<24x128xf32>
    %48 = arith.select %46, %44, %47 : vector<24x128xi1>, vector<24x128xf32>
    %c126_i32 = arith.constant 126 : i32
    %49 = tpu.dynamic_rotate %32 by %c126_i32 dim 1 : vector<24x128xf32>, i32 -> vector<24x128xf32>
    %cst_16 = arith.constant 0.000000e+00 : f32
    %50 = vector.shape_cast %7 : vector<1x128xi1> to vector<1x128xi1>
    %51 = vector.broadcast %50 : vector<1x128xi1> to vector<24x128xi1>
    %52 = vector.broadcast %cst_16 : f32 to vector<24x128xf32>
    %53 = arith.select %51, %49, %52 : vector<24x128xi1>, vector<24x128xf32>
    %cst_17 = arith.constant 1.000000e+00 : f32
    %54 = vector.broadcast %cst_17 : f32 to vector<1x128xf32>
    %55 = tpu.concatenate %38, %43, %32, %48, %53, %54 in 0 : vector<24x128xf32>, vector<24x128xf32>, vector<24x128xf32>, vector<24x128xf32>, vector<24x128xf32>, vector<1x128xf32> -> vector<121x128xf32>
    %c0_18 = arith.constant 0 : index
    %c0_19 = arith.constant 0 : index
    %56 = vector.load %arg5[%c0_18, %c0_19] : memref<24x121xbf16, #tpu.memory_space<vmem>>, vector<24x121xbf16>
    %57 = arith.truncf %55 : vector<121x128xf32> to vector<121x128xbf16>
    %cst_20 = arith.constant dense<0.000000e+00> : vector<24x128xf32>
    %58 = tpu.matmul %56, %57, %cst_20 {dimension_numbers = #tpu.dot_dimension_numbers<[1], [0], [0], [1], [0, 0, 1, 1], [], []>} : vector<24x121xbf16>, vector<121x128xbf16>, vector<24x128xf32> -> vector<24x128xf32>
    %cst_21 = arith.constant 2.000000e+01 : f32
    %59 = vector.broadcast %cst_21 : f32 to vector<24x128xf32>
    %60 = arith.minimumf %58, %59 : vector<24x128xf32>
    %61 = math.exp %60 : vector<24x128xf32>
    %cst_22 = arith.constant 2.000000e+00 : f32
    %62 = vector.broadcast %cst_22 : f32 to vector<24x128xf32>
    %63 = arith.addf %61, %62 : vector<24x128xf32>
    %64 = arith.mulf %61, %63 : vector<24x128xf32>
    %65 = arith.mulf %58, %64 : vector<24x128xf32>
    %cst_23 = arith.constant 2.000000e+00 : f32
    %66 = vector.broadcast %cst_23 : f32 to vector<24x128xf32>
    %67 = arith.addf %64, %66 : vector<24x128xf32>
    %68 = tpu.reciprocal %67 {approx = true} : vector<24x128xf32> -> vector<24x128xf32>
    %69 = arith.mulf %65, %68 : vector<24x128xf32>
    %c1_i32_24 = arith.constant 1 : i32
    %70 = tpu.dynamic_rotate %33 by %c1_i32_24 dim 1 : vector<8x128xf32>, i32 -> vector<8x128xf32>
    %cst_25 = arith.constant 0.000000e+00 : f32
    %71 = vector.shape_cast %9 : vector<1x128xi1> to vector<1x128xi1>
    %72 = vector.broadcast %71 : vector<1x128xi1> to vector<8x128xi1>
    %73 = vector.broadcast %cst_25 : f32 to vector<8x128xf32>
    %74 = arith.select %72, %70, %73 : vector<8x128xi1>, vector<8x128xf32>
    %75 = arith.addf %74, %33 : vector<8x128xf32>
    %c127_i32_26 = arith.constant 127 : i32
    %76 = tpu.dynamic_rotate %33 by %c127_i32_26 dim 1 : vector<8x128xf32>, i32 -> vector<8x128xf32>
    %cst_27 = arith.constant 0.000000e+00 : f32
    %77 = vector.shape_cast %5 : vector<1x128xi1> to vector<1x128xi1>
    %78 = vector.broadcast %77 : vector<1x128xi1> to vector<8x128xi1>
    %79 = vector.broadcast %cst_27 : f32 to vector<8x128xf32>
    %80 = arith.select %78, %76, %79 : vector<8x128xi1>, vector<8x128xf32>
    %81 = arith.addf %75, %80 : vector<8x128xf32>
    %cst_28 = arith.constant 0.333333343 : f32
    %82 = vector.broadcast %cst_28 : f32 to vector<8x128xf32>
    %83 = arith.mulf %81, %82 : vector<8x128xf32>
    %c0_29 = arith.constant 0 : index
    %c0_30 = arith.constant 0 : index
    %84 = vector.load %arg6[%c0_29, %c0_30] : memref<16x24xbf16, #tpu.memory_space<vmem>>, vector<16x24xbf16>
    %85 = arith.truncf %69 : vector<24x128xf32> to vector<24x128xbf16>
    %cst_31 = arith.constant dense<0.000000e+00> : vector<16x128xf32>
    %86 = tpu.matmul %84, %85, %cst_31 {dimension_numbers = #tpu.dot_dimension_numbers<[1], [0], [0], [1], [0, 0, 1, 1], [], []>} : vector<16x24xbf16>, vector<24x128xbf16>, vector<16x128xf32> -> vector<16x128xf32>
    %c0_32 = arith.constant 0 : index
    %c0_33 = arith.constant 0 : index
    %87 = vector.load %arg7[%c0_32, %c0_33] : memref<16x8xbf16, #tpu.memory_space<vmem>>, vector<16x8xbf16>
    %88 = arith.truncf %83 : vector<8x128xf32> to vector<8x128xbf16>
    %cst_34 = arith.constant dense<0.000000e+00> : vector<16x128xf32>
    %89 = tpu.matmul %87, %88, %cst_34 {dimension_numbers = #tpu.dot_dimension_numbers<[1], [0], [0], [1], [0, 0, 1, 1], [], []>} : vector<16x8xbf16>, vector<8x128xbf16>, vector<16x128xf32> -> vector<16x128xf32>
    %90 = arith.addf %86, %89 : vector<16x128xf32>
    %c0_35 = arith.constant 0 : index
    %c0_36 = arith.constant 0 : index
    %91 = vector.load %arg8[%c0_35, %c0_36] : memref<16x1xf32, #tpu.memory_space<vmem>>, vector<16x1xf32>
    %92 = vector.broadcast %91 : vector<16x1xf32> to vector<16x128xf32>
    %93 = arith.addf %90, %92 : vector<16x128xf32>
    %94 = arith.addf %93, %0 : vector<16x128xf32>
    %cst_37 = arith.constant 2.000000e+01 : f32
    %95 = vector.broadcast %cst_37 : f32 to vector<16x128xf32>
    %96 = arith.minimumf %94, %95 : vector<16x128xf32>
    %97 = math.exp %96 : vector<16x128xf32>
    %cst_38 = arith.constant 2.000000e+00 : f32
    %98 = vector.broadcast %cst_38 : f32 to vector<16x128xf32>
    %99 = arith.addf %97, %98 : vector<16x128xf32>
    %100 = arith.mulf %97, %99 : vector<16x128xf32>
    %101 = arith.mulf %94, %100 : vector<16x128xf32>
    %cst_39 = arith.constant 2.000000e+00 : f32
    %102 = vector.broadcast %cst_39 : f32 to vector<16x128xf32>
    %103 = arith.addf %100, %102 : vector<16x128xf32>
    %104 = tpu.reciprocal %103 {approx = true} : vector<16x128xf32> -> vector<16x128xf32>
    %105 = arith.mulf %101, %104 : vector<16x128xf32>
    %c0_40 = arith.constant 0 : index
    %c0_41 = arith.constant 0 : index
    %106 = vector.load %arg9[%c0_40, %c0_41] : memref<16x128xf32, #tpu.memory_space<vmem>>, vector<16x128xf32>
    tpu.vector_store %arg9[%c0_40, %c0_41], %105 {strides = array<i32>} : memref<16x128xf32, #tpu.memory_space<vmem>>, vector<16x128xf32>,
    return
  }
  func.func @transform_0(%arg0: i32) -> (i32, i32) {
    %c0_i32 = arith.constant 0 : i32
    %c0_i32_0 = arith.constant 0 : i32
    return %c0_i32, %arg0 : i32, i32
  }
  func.func @transform_1(%arg0: i32) -> (i32, i32) {
    %c0_i32 = arith.constant 0 : i32
    %c0_i32_0 = arith.constant 0 : i32
    %c0_i32_1 = arith.constant 0 : i32
    return %c0_i32, %c0_i32_0 : i32, i32
  }
  func.func @transform_2(%arg0: i32) -> (i32, i32) {
    %c0_i32 = arith.constant 0 : i32
    %c0_i32_0 = arith.constant 0 : i32
    %c0_i32_1 = arith.constant 0 : i32
    return %c0_i32, %c0_i32_0 : i32, i32
  }
  func.func @transform_3(%arg0: i32) -> (i32, i32) {
    %c0_i32 = arith.constant 0 : i32
    %c0_i32_0 = arith.constant 0 : i32
    %c0_i32_1 = arith.constant 0 : i32
    return %c0_i32, %c0_i32_0 : i32, i32
  }
  func.func @transform_4(%arg0: i32) -> (i32, i32) {
    %c0_i32 = arith.constant 0 : i32
    %c0_i32_0 = arith.constant 0 : i32
    %c0_i32_1 = arith.constant 0 : i32
    return %c0_i32, %c0_i32_0 : i32, i32
  }
  func.func @transform_5(%arg0: i32) -> (i32, i32) {
    %c0_i32 = arith.constant 0 : i32
    %c0_i32_0 = arith.constant 0 : i32
    %c0_i32_1 = arith.constant 0 : i32
    return %c0_i32, %c0_i32_0 : i32, i32
  }
  func.func @transform_6(%arg0: i32) -> (i32, i32) {
    %c0_i32 = arith.constant 0 : i32
    %c0_i32_0 = arith.constant 0 : i32
    %c0_i32_1 = arith.constant 0 : i32
    return %c0_i32, %c0_i32_0 : i32, i32
  }
  func.func @transform_7(%arg0: i32) -> (i32, i32) {
    %c0_i32 = arith.constant 0 : i32
    %c0_i32_0 = arith.constant 0 : i32
    %c0_i32_1 = arith.constant 0 : i32
    return %c0_i32, %c0_i32_0 : i32, i32
  }
  func.func @transform_8(%arg0: i32) -> (i32, i32) {
    %c0_i32 = arith.constant 0 : i32
    %c0_i32_0 = arith.constant 0 : i32
    return %c0_i32, %arg0 : i32, i32
  }
}

</mosaic_0001>

<bundles_post_ra>
// kernel: res2block_forward.1
= control target key start
LH: loop header
LB: loop body
LE: loop exit
PB: predicated region body
PF: predicated region fallthrough
CT: control target
= control target key end

     0   :  { %s1200_s27 = smov 0   ;;  %s1202_s28 = smov 0   ;;  %s1377_s0 = inlined_call_operand.vmem [shape: f32[16,512], index: 0, kind: input, shape index: {}]   ;;  %s1378_s1 = inlined_call_operand.vmem [shape: bf16[32,16], index: 1, kind: input, shape index: {}]   ;;  %s1379_s2 = inlined_call_operand.vmem [shape: f32[32,1], index: 2, kind: input, shape index: {}]   ;;  %s1380_s3 = inlined_call_operand.vmem [shape: f32[32,1], index: 3, kind: input, shape index: {}]   ;;  %s1381_s4 = inlined_call_operand.vmem [shape: bf16[24,121], index: 4, kind: input, shape index: {}]   ;;  %s1382_s5 = inlined_call_operand.vmem [shape: bf16[16,24], index: 5, kind: input, shape index: {}]   ;;  %s1383_s6 = inlined_call_operand.vmem [shape: bf16[16,8], index: 6, kind: input, shape index: {}]   ;;  %s1384_s7 = inlined_call_operand.vmem [shape: f32[16,1], index: 7, kind: input, shape index: {}]   ;;  %s1385_s8 = inlined_call_operand.vmem [shape: f32[16,512], index: 8, kind: output, shape index: {}]  }
   0x1   :  { %s1204_s29 = smov 0  }
   0x2 LB: > { %s922_s30 = sadd.s32 4294967295, %s1143_s29   ;;  %s1217_s9 = sadd.s32 1, %s1143_s29   ;;  %s1143_s29 = sphi %s1204_s29, %s1391_s29   ;;  %s1139_s28 = sphi %s1202_s28, %s1390_s28   ;;  %s1135_s27 = sphi %s1200_s27, %s1389_s27  }
   0x3   : > { %s22_s10 = ssub.s32 %s1143_s29, %s1217_s9  ;;  %s25_s11 = sadd.s32 1, %s1139_s28 }
   0x4   : > { %p23_p0 = scmp.eq.s32.totalorder %s22_s10, 0  ;;  %p32_p1 = scmp.ne.s32.totalorder %s1139_s28, %s1135_s27 }
   0x5   : > { %p33_p2 = scmp.eq.s32.totalorder %s1143_s29, 0  ;;  %p209_p3 = scmp.eq.s32.totalorder %s922_s30, 3 }
   0x6   : > { %s1228_s12 = scalar_select %p23_p0, %s1139_s28, %s25_s11  }
   0x7   : > { %p34_p4 = por %p33_p2, %p32_p1  ;;  %p1230_p5 = por %p209_p3, %p32_p1 }
   0x8   : > { %p925_p6 = scmp.ge.s32.totalorder %s1143_s29, 4 }
   0xa   : > { %252 = sbr.rel (%p925_p6) target bundleno = 24 (0x18), region = 44 }
  0x11   : > { %255 = sbr.rel (!%p34_p4) target bundleno = 24 (0x18), region = 48  ;;  %s257_s14 = sand.u32 (%p34_p4), 1, %s1139_s28  }
  0x12   : > { %s927_s15 = sshll.u32 (%p34_p4), %s1143_s29, 3  ;;  %s926_s16 = sshll.u32 (%p34_p4), %s257_s14, 4 }
  0x13   : > { %s261_s19 = scalar_lea.vmem (%p34_p4), %s1377_s0, %s927_s15  ;;  %s259_s20 = scalar_lea.vmem (%p34_p4), [#allocation2], %s926_s16 }
  0x14   : > { %v291_v0 = vld [vmem:[%s261_s19] sm:$0xff] (%p34_p4) }
  0x15   : > { %v293_v1 = vld [vmem:[%s261_s19 + $0x20] sm:$0xff] (%p34_p4)  ;;  %292 = vst [vmem:[%s259_s20] sm:$0xff] (%p34_p4), %v291_v0 }
  0x16   : > { %294 = vst [vmem:[%s259_s20 + $0x8] sm:$0xff] (%p34_p4), %v293_v1 }
  0x18 PF: > { %p928_p7 = scmp.ge.s32.totalorder %s1143_s29, 1  ;;  %p299_p8 = scmp.lt.s32.totalorder %s1143_s29, 5 }
  0x1a   : > { %p300_p9 = pnand %p928_p7, %p299_p8 }
  0x1b   : > { %s306_s21 = sand.u32 (!%p300_p9), 1, %s1135_s27   ;;  %v1079_v2 = vld [vmem:[%s1378_s1] sm:$0xff] (!%p300_p9)   ;;  %vm363_vm0 = vcmask (!%p300_p9), 130048   ;;  %v1145_v7 = vmov (!%p300_p9), 0   ;;  %v1080_v9 = vld [vmem:[%s1378_s1 + $0x8] sm:$0xff] (!%p300_p9)   ;;  %v457_v12 = vld [vmem:[%s1379_s2 + $0x10] sm:$0xff] (!%p300_p9)  ;;  %v341_v1 = vlaneseq (!%p300_p9) }
  0x1c   : > { %303 = sbr.rel (%p300_p9) target bundleno = 965 (0x3c5), region = 86  ;;  %s1246_s24 = sshll.u32 (!%p300_p9), %s306_s21, 4  ;;  %985 = vmatprep.mubr.msk.bf16.mxu0 (!%p300_p9), %vm363_vm0, %v1079_v2  ;;  %v455_v3 = vld [vmem:[%s1379_s2] sm:$0xff] (!%p300_p9)  ;;  %1057 = vset.pattern.permute.xlu0 (!%p300_p9), %v1145_v7  ;;  %v456_v10 = vld [vmem:[%s1379_s2 + $0x8] sm:$0xff] (!%p300_p9)  ;;  %v485_v13 = vld [vmem:[%s1380_s3 + $0x10] sm:$0xff] (!%p300_p9)  ;;  %vm574_vm1 = vcmask (!%p300_p9), 990208  }
  0x1d   : > { %v483_v4 = vld [vmem:[%s1380_s3] sm:$0xff] (!%p300_p9)  ;;  %s308_s14 = scalar_lea.vmem (!%p300_p9), [#allocation2], %s1246_s24  ;;  %1058 = vset.pattern.permute.xlu1 (!%p300_p9), %v1145_v7  ;;  %461 = vperm.xlu0 (!%p300_p9), %1057, %v455_v3   ;;  %v484_v11 = vld [vmem:[%s1380_s3 + $0x8] sm:$0xff] (!%p300_p9)  ;;  %s1146_s25 = smov (!%p300_p9), 2   ;;  %v486_v60 = vld [vmem:[%s1380_s3 + $0x18] sm:$0xff] (!%p300_p9)  ;;  %v342_v2 = vand.u32 (!%p300_p9), 127, %v341_v1 }
  0x1e   : > { %v1256_v5 = vld [vmem:[%s308_s14] sm:$0xff] (!%p300_p9)  ;;  %v1258_v6 = vld [vmem:[%s308_s14 + $0x8] sm:$0xff] (!%p300_p9)  ;;  %489 = vperm.xlu1 (!%p300_p9), %1058, %v483_v4   ;;  %s1147_s26 = smov (!%p300_p9), 1   ;;  %s1148_s10 = smov (!%p300_p9), 127   ;;  %vm1150_vm8 = vmmov (!%p300_p9), 1   ;;  %vm581_vm11 = vcmask (!%p300_p9), 1043456  }
  0x1f   : > { %v352_v8 = vpack.c.bf16 (!%p300_p9), %v1258_v6, %v1256_v5  ;;  %s1149_s11 = smov (!%p300_p9), 126   ;;  %v458_v61 = vld [vmem:[%s1379_s2 + $0x18] sm:$0xff] (!%p300_p9)  ;;  %v1081_v62 = vld [vmem:[%s1381_s4] sm:$0xff] (!%p300_p9)   ;;  %v1301_v3 = vand.u32 (!%p300_p9), 31, %v342_v2  ;;  %vm582_vm13 = vcmask (!%p300_p9), 1044480   ;;  %vm1154_vm15 = vmmov (!%p300_p9), 0  }
  0x20   : > { %1005 = vmatprep.mubr.msk.bf16.mxu1 (!%p300_p9), %vm574_vm1, %v1081_v62  ;;  %s337_s27 = scalar_lea.vmem (!%p300_p9), [#allocation3], %s1246_s24 }
  0x21   : > { %983 = vmatprep.subr.bf16.mxu0 (!%p300_p9), %v352_v8  ;;  %466 = vperm.xlu0 (!%p300_p9), %1057, %v456_v10   ;;  %vm347_vm2 = vcmp.ge.s32.totalorder (!%p300_p9), %v1301_v3, 2  ;;  %vm346_vm3 = vcmp.ge.s32.totalorder (!%p300_p9), %v1301_v3, 1  ;;  %vm344_vm7 = vcmp.lt.s32.totalorder (!%p300_p9), %v1301_v3, 31  ;;  %vm345_vm10 = vcmp.lt.s32.totalorder (!%p300_p9), %v1301_v3, 30 }
  0x22   : > { %984 = vmatpush3.bf16.msra.mxu0 (!%p300_p9), %v352_v8  ;;  %494 = vperm.xlu1 (!%p300_p9), %1058, %v484_v11   ;;  %vm937_vm4 = vmpackc.low (!%p300_p9), %vm347_vm2, %vm347_vm2 }
  0x23   : > { %vm940_vm5 = vmpackc.low %vm346_vm3, %vm347_vm2  ;;  %s962_s15 = sshll.u32 (%p1230_p5), %s922_s30, 3 }
  0x24   : > { %vm943_vm6 = vmpackc.low %vm346_vm3, %vm346_vm3  ;;  %s829_s18 = scalar_lea.vmem (%p1230_p5), %s1385_s8, %s962_s15 }
  0x25   : > { %986 = vmatmul.mubr.msk.bf16.vlgmr.msra.gmra.mrb[0].mxu0 %vm363_vm0, %v1080_v9  ;;  %471 = vperm.xlu0 %1057, %v457_v12   ;;  %vm946_vm9 = vmpackc.low %vm344_vm7, %vm1150_vm8  ;;  %vm684_vm0 = vcmask 64512  }
  0x26   : > { %499 = vperm.xlu1 %1058, %v485_v13   ;;  %vm1318_vm12 = vmpackc.low %vm344_vm7, %vm344_vm7 }
  0x27   : > { %vm952_vm14 = vmpackc.low %vm345_vm10, %vm345_vm10 }
  0x9c   : > { %v462_v33 = vpop.permute.xlu0 %461 }
  0x9d   : > { %v490_v36 = vpop.permute.xlu1 %489 }
  0xa0   : > { %v467_v38 = vpop.permute.xlu0 %466 }
  0xa1   : > { %v495_v39 = vpop.permute.xlu1 %494 }
  0xa4   : > { %v472_v43 = vpop.permute.xlu0 %471 }
  0xa5   : > { %v500_v48 = vpop.permute.xlu1 %499 }
  0xf8   : > { %v987_v14 = vpop.f32.mrb[0].mxu0 }
  0xf9   : > { %v421_v15 = vmin.f32 %v987_v14, 20.0  ;;  %v404_v16 = vpop.f32.mrb[1].mxu0 }
  0xfa   : > { %v419_v17 = vmin.f32 %v404_v16, 20.0  ;;  %v1278_v18 = vpop.f32.mrb[2].mxu0 }
  0xfb   : > { %v427_v19 = vmul.f32 1.442695, %v421_v15  ;;  %v407_v20 = vpop.f32.mrb[3].mxu0  ;;  %v422_v63 = vmin.f32 %v1278_v18, 20.0 }
  0xfc   : > { %v423_v21 = vmul.f32 1.442695, %v419_v17  ;;  %v420_v22 = vmin.f32 %v407_v20, 20.0 }
  0xfd   : > { %1085 = vpow2.f32 %v427_v19  ;;  %v429_v0 = vmul.f32 1.442695, %v422_v63 }
  0xfe   : > { %1087 = vpow2.f32 %v423_v21  ;;  %v425_v23 = vmul.f32 1.442695, %v420_v22 }
 0x100   : > { %1089 = vpow2.f32 %v425_v23 }
 0x107   : > { %v1086_v24 = vpop.eup %1085 }
 0x108   : > { %v1088_v25 = vpop.eup %1087  ;;  %v433_v26 = vadd.f32 2.0, %v1086_v24 }
 0x109   : > { %v431_v27 = vadd.f32 2.0, %v1088_v25 }
 0x10a   : > { %v1090_v28 = vpop.eup %1089  ;;  %v437_v29 = vmul.f32 %v1086_v24, %v433_v26 }
 0x10b   : > { %v435_v30 = vmul.f32 %v1088_v25, %v431_v27  ;;  %v432_v31 = vadd.f32 2.0, %v1090_v28 }
 0x10c   : > { %v445_v32 = vadd.f32 2.0, %v437_v29  ;;  %v441_v40 = vmul.f32 %v987_v14, %v437_v29 }
 0x10d   : > { %v443_v34 = vadd.f32 2.0, %v435_v30  ;;  %v436_v35 = vmul.f32 %v1090_v28, %v432_v31  ;;  %v439_v42 = vmul.f32 %v435_v30, %v404_v16 }
 0x10e   : > { %1091 = vrcp.f32 %v445_v32 }
 0x10f   : > { %1093 = vrcp.f32 %v443_v34  ;;  %v444_v37 = vadd.f32 2.0, %v436_v35  ;;  %v440_v46 = vmul.f32 %v436_v35, %v407_v20  ;;  %v1151_v34 = vmov 65535  }
 0x110   : > { %v583_v35 = vsel %vm581_vm11, 4294967295, %v1151_v34  ;;  %v1084_v34 = vld [vmem:[%s1382_s5] sm:$0xff]  }
 0x111   : > { %1095 = vrcp.f32 %v444_v37  ;;  %v1152_v37 = vmov 1.0  }
 0x112   : > { %1097 = vpow2.f32 %v429_v0 }
 0x118   : > { %v1092_v41 = vpop.eup %1091 }
 0x119   : > { %v1094_v44 = vpop.eup %1093  ;;  %v453_v45 = vmul.f32 %v1092_v41, %v441_v40  ;;  %v584_v41 = vsel %vm582_vm13, %v583_v35, 0 }
 0x11a   : > { %v451_v47 = vmul.f32 %v1094_v44, %v439_v42 }
 0x11b   : > { %v1096_v49 = vpop.eup %1095  ;;  %v481_v50 = vmul.f32 %v472_v43, %v453_v45  ;;  %v1153_v45 = vmov 0.0  }
 0x11c   : > { %v479_v51 = vmul.f32 %v462_v33, %v451_v47  ;;  %v452_v52 = vmul.f32 %v1096_v49, %v440_v46  ;;  %v1098_v7 = vpop.eup %1097  ;;  %1009 = vmatprep.subr.bf16.mxu0 %v1153_v45  ;;  %v786_v49 = vld [vmem:[%s1384_s7 + $0x8] sm:$0xff]  ;;  %1011 = vmatprep.mubr.msk.bf16.mxu0 %vm1154_vm15, %v1153_v45 }
 0x11d   : > { %v1280_v53 = vadd.f32 %v500_v48, %v481_v50  ;;  %v434_v12 = vadd.f32 2.0, %v1098_v7  ;;  %v785_v50 = vld [vmem:[%s1384_s7] sm:$0xff] }
 0x11e   : > { %v480_v54 = vmul.f32 %v467_v38, %v452_v52  ;;  %v507_v55 = vadd.f32 %v490_v36, %v479_v51 }
 0x11f   : > { %515 = vrot.lane.b32.xlu1 %v1280_v53, %s1146_s25  ;;  %v438_v19 = vmul.f32 %v1098_v7, %v434_v12 }
 0x120   : > { %v508_v56 = vadd.f32 %v495_v39, %v480_v54 }
 0x121   : > { %v446_v22 = vadd.f32 2.0, %v438_v19  ;;  %v442_v40 = vmul.f32 %v1278_v18, %v438_v19  ;;  %v1082_v18 = vld [vmem:[%s1381_s4 + $0x8] ss:$0 sps:$4 sm:$0xff]  }
 0x122   : > { %v1064_v57 = vpack.i.bf16 %v1280_v53, %v508_v56  ;;  %v1059_v58 = vpack.i.bf16 %v508_v56, %v507_v55  ;;  %v561_v59 = vpack.c.bf16 %v508_v56, %v507_v55 }
 0x123   : > { %1099 = vrcp.f32 %v446_v22 }
 0x124   : > { %1065 = vrot.lane.b32.xlu1 %v1064_v57, %s1147_s26  ;;  %1060 = vrot.lane.b32.xlu0 %v1059_v58, %s1146_s25 }
 0x128   : > { %537 = vrot.lane.b32.xlu1 %v1280_v53, %s1148_s10  ;;  %522 = vrot.lane.b32.xlu0 %v507_v55, %s1147_s26 }
 0x12c   : > { %548 = vrot.lane.b32.xlu1 %v1280_v53, %s1149_s11  ;;  %1070 = vrot.lane.b32.xlu0 %v1059_v58, %s1148_s10 }
 0x12d   : > { %v1100_v36 = vpop.eup %1099 }
 0x12e   : > { %v454_v42 = vmul.f32 %v1100_v36, %v442_v40 }
 0x130   : > { %504 = vperm.xlu1 %1058, %v486_v60   ;;  %1075 = vrot.lane.b32.xlu0 %v1059_v58, %s1149_s11  ;;  %v1083_v60 = vld [vmem:[%s1383_s6] sm:$0xff]  }
 0x134   : > { %476 = vperm.xlu0 %1057, %v458_v61  }
 0x191   : > { %v516_v4 = vpop.permute.xlu1 %515 }
 0x196   : > { %v1061_v8 = vpop.permute.xlu0 %1060  ;;  %v1066_v11 = vpop.permute.xlu1 %1065 }
 0x197   : > { %v1063_v9 = vunpack.i.h.bf16 %v1061_v8  ;;  %v1062_v10 = vunpack.i.l.bf16 %v1061_v8  ;;  %v1068_v15 = vunpack.i.h.bf16 %v1066_v11  ;;  %v1067_v16 = vunpack.i.l.bf16 %v1066_v11 }
 0x199   : > { %v938_v13 = vpack.c.bf16 %v1063_v9, %v1062_v10  ;;  %v944_v20 = vpack.c.bf16 %v1068_v15, %v1067_v16 }
 0x19a   : > { %v523_v14 = vpop.permute.xlu0 %522  ;;  %v538_v23 = vpop.permute.xlu1 %537 }
 0x19b   : > { %v941_v17 = vpack.c.bf16 %v523_v14, %v516_v4  ;;  %989 = vmatprep.subr.msk.bf16.mxu1 %vm937_vm4, %v938_v13 }
 0x19c   : > { %990 = vmatpush3.bf16.msk.msra.mxu1 %vm937_vm4, %v938_v13 }
 0x19d   : > { %991 = vmatprep.subr.msk.bf16.mxu1 %vm940_vm5, %v941_v17 }
 0x19e   : > { %v1071_v21 = vpop.permute.xlu0 %1070  ;;  %v549_v28 = vpop.permute.xlu1 %548 }
 0x19f   : > { %v1072_v24 = vunpack.i.l.bf16 %v1071_v21  ;;  %v1073_v25 = vunpack.i.h.bf16 %v1071_v21  ;;  %v554_v33 = vsel %vm345_vm10, %v549_v28, 0.0 }
 0x1a0   : > { %992 = vmatpush3.bf16.msk.msra.mxu1 %vm940_vm5, %v941_v17  ;;  %v565_v38 = vpack.c.bf16 %v1152_v37, %v554_v33 }
 0x1a1   : > { %993 = vmatprep.subr.msk.bf16.mxu1 %vm943_vm6, %v944_v20  ;;  %v947_v26 = vpack.c.bf16 %v1072_v24, %v1280_v53  ;;  %v950_v30 = vpack.c.bf16 %v538_v23, %v1073_v25 }
 0x1a2   : > { %v1076_v27 = vpop.permute.xlu0 %1075  ;;  %v586_v43 = vand.u32 %v584_v41, %v565_v38 }
 0x1a3   : > { %v1078_v31 = vunpack.i.h.bf16 %v1076_v27  ;;  %v1077_v32 = vunpack.i.l.bf16 %v1076_v27 }
 0x1a4   : > { %994 = vmatpush3.bf16.msk.msra.mxu1 %vm943_vm6, %v944_v20 }
 0x1a5   : > { %995 = vmatprep.subr.bf16.mxu1 %v561_v59  ;;  %v953_v39 = vpack.c.bf16 %v1078_v31, %v1077_v32 }
 0x1a8   : > { %996 = vmatpush3.bf16.msra.mxu1 %v561_v59 }
 0x1a9   : > { %997 = vmatprep.subr.msk.bf16.mxu1 %vm946_vm9, %v947_v26 }
 0x1ac   : > { %998 = vmatpush3.bf16.msk.msra.mxu1 %vm946_vm9, %v947_v26 }
 0x1ad   : > { %999 = vmatprep.subr.msk.bf16.mxu1 %vm1318_vm12, %v950_v30 }
 0x1af   : > { %v505_v47 = vpop.permute.xlu1 %504 }
 0x1b0   : > { %1000 = vmatpush3.bf16.msk.msra.mxu1 %vm1318_vm12, %v950_v30 }
 0x1b1   : > { %1001 = vmatprep.subr.msk.bf16.mxu1 %vm952_vm14, %v953_v39 }
 0x1b3   : > { %v477_v44 = vpop.permute.xlu0 %476 }
 0x1b4   : > { %v482_v46 = vmul.f32 %v477_v44, %v454_v42  ;;  %1002 = vmatpush3.bf16.msk.msra.mxu1 %vm952_vm14, %v953_v39 }
 0x1b5   : > { %1003 = vmatprep.subr.bf16.mxu1 %v586_v43 }
 0x1b6   : > { %v510_v48 = vadd.f32 %v505_v47, %v482_v46 }
 0x1b8   : > { %667 = vrot.lane.b32.xlu1 %v510_v48, %s1148_s10  ;;  %663 = vrot.lane.b32.xlu0 %v510_v48, %s1147_s26 }
 0x1b9   : > { %1004 = vmatpush3.bf16.msra.mxu1 %v586_v43 }
 0x1bc   : > { %1006 = vmatmul.mubr.msk.bf16.vlgmr.msra.gmra.mrb[0].mxu1 %vm574_vm1, %v1082_v18  ;;  %794 = vperm.xlu1 %1058, %v786_v49   ;;  %vm737_vm1 = vcmask 195584  }
 0x1bd   : > { %789 = vperm.xlu0 %1057, %v785_v50  }
 0x22a   : > { %v668_v51 = vpop.permute.xlu1 %667  ;;  %v664_v52 = vpop.permute.xlu0 %663 }
 0x22b   : > { %v665_v53 = vsel %vm346_vm3, %v664_v52, 0.0  ;;  %v669_v55 = vsel %vm344_vm7, %v668_v51, 0.0 }
 0x22c   : > { %v666_v54 = vadd.f32 %v665_v53, %v510_v48 }
 0x22e   : > { %v670_v56 = vadd.f32 %v669_v55, %v666_v54 }
 0x230   : > { %v671_v57 = vmul.f32 0.33333334, %v670_v56 }
 0x232   : > { %v678_v58 = vpack.c.bf16 %v671_v57, %v671_v57 }
 0x234   : > { %v689_v59 = vsel %vm581_vm11, %v678_v58, 0 }
 0x235   : > { %1010 = vmatpush3.bf16.msra.mxu0 %v689_v59 }
 0x236   : > { %1015 = vmatprep.subr.bf16.mxu0 %v1153_v45 }
 0x238   : > { %1012 = vmatmul.mubr.msk.bf16.vlgmr.msra.gmra.mrb[4].mxu0 %vm684_vm0, %v1083_v60 }
 0x239   : > { %1019 = vmatprep.mubr.msk.bf16.mxu0 %vm1154_vm15, %v1153_v45 }
 0x23b   : > { %v795_v47 = vpop.permute.xlu1 %794 }
 0x23c   : > { %v790_v42 = vpop.permute.xlu0 %789 }
 0x28f   : > { %v1007_v61 = vpop.f32.mrb[0].mxu1 }
 0x290   : > { %v638_v62 = vmin.f32 %v1007_v61, 20.0  ;;  %v622_v63 = vpop.f32.mrb[1].mxu1 }
 0x291   : > { %v636_v0 = vmin.f32 %v622_v63, 20.0  ;;  %v1008_v1 = vpop.f32.mrb[2].mxu1 }
 0x292   : > { %v643_v2 = vmul.f32 1.442695, %v638_v62  ;;  %v625_v3 = vpop.f32.mrb[3].mxu1 }
 0x293   : > { %v639_v4 = vmul.f32 1.442695, %v636_v0  ;;  %v637_v7 = vmin.f32 %v625_v3, 20.0 }
 0x294   : > { %1101 = vpow2.f32 %v643_v2 }
 0x295   : > { %1103 = vpow2.f32 %v639_v4  ;;  %v641_v8 = vmul.f32 1.442695, %v637_v7 }
 0x297   : > { %1105 = vpow2.f32 %v641_v8 }
 0x29e   : > { %v1102_v9 = vpop.eup %1101 }
 0x29f   : > { %v1104_v10 = vpop.eup %1103  ;;  %v647_v11 = vadd.f32 2.0, %v1102_v9 }
 0x2a0   : > { %v645_v12 = vadd.f32 2.0, %v1104_v10 }
 0x2a1   : > { %v1106_v13 = vpop.eup %1105  ;;  %v650_v14 = vmul.f32 %v1102_v9, %v647_v11 }
 0x2a2   : > { %v648_v15 = vmul.f32 %v1104_v10, %v645_v12  ;;  %v646_v16 = vadd.f32 2.0, %v1106_v13 }
 0x2a3   : > { %v656_v17 = vadd.f32 2.0, %v650_v14  ;;  %v653_v24 = vmul.f32 %v1007_v61, %v650_v14 }
 0x2a4   : > { %v654_v19 = vadd.f32 2.0, %v648_v15  ;;  %v649_v20 = vmul.f32 %v1106_v13, %v646_v16  ;;  %v651_v25 = vmul.f32 %v648_v15, %v622_v63 }
 0x2a5   : > { %1107 = vrcp.f32 %v656_v17 }
 0x2a6   : > { %1109 = vrcp.f32 %v654_v19  ;;  %v655_v21 = vadd.f32 2.0, %v649_v20  ;;  %v652_v26 = vmul.f32 %v649_v20, %v625_v3 }
 0x2a8   : > { %1111 = vrcp.f32 %v655_v21 }
 0x2af   : > { %v1108_v22 = vpop.eup %1107 }
 0x2b0   : > { %v1110_v23 = vpop.eup %1109  ;;  %v662_v28 = vmul.f32 %v1108_v22, %v653_v24 }
 0x2b1   : > { %v660_v29 = vmul.f32 %v1110_v23, %v651_v25 }
 0x2b2   : > { %v1112_v27 = vpop.eup %1111  ;;  %v675_v32 = vpack.c.bf16 %v662_v28, %v662_v28 }
 0x2b3   : > { %v661_v30 = vmul.f32 %v1112_v27, %v652_v26 }
 0x2b4   : > { %v742_v33 = vsel %vm581_vm11, %v675_v32, 0 }
 0x2b5   : > { %v674_v31 = vpack.c.bf16 %v661_v30, %v660_v29 }
 0x2b7   : > { %1016 = vmatpush3.bf16.msra.mxu0 %v674_v31 }
 0x2b8   : > { %1017 = vmatprep.subr.bf16.mxu0 %v1153_v45 }
 0x2bb   : > { %1018 = vmatpush3.bf16.msra.mxu0 %v742_v33 }
 0x2be   : > { %1020 = vmatmul.mubr.msk.bf16.vlgmr.msra.gmra.mrb[8].mxu0 %vm737_vm1, %v1084_v34 }
 0x30b   : > { %v725_v35 = vpop.f32.mrb[4].mxu0 }
 0x30c   : > { %v1013_v36 = vpop.f32.mrb[5].mxu0 }
 0x30d   : > { %v728_v37 = vpop.f32.mrb[6].mxu0 }
 0x30e   : > { %v1014_v38 = vpop.f32.mrb[7].mxu0 }
 0x391   : > { %v778_v39 = vpop.f32.mrb[8].mxu0 }
 0x392   : > { %v779_v40 = vadd.f32 %v778_v39, %v725_v35  ;;  %v1021_v41 = vpop.f32.mrb[9].mxu0 }
 0x393   : > { %v781_v43 = vpop.f32.mrb[10].mxu0 }
 0x394   : > { %v797_v44 = vadd.f32 %v790_v42, %v779_v40  ;;  %v782_v45 = vadd.f32 %v781_v43, %v728_v37  ;;  %v1022_v46 = vpop.f32.mrb[11].mxu0 }
 0x396   : > { %v799_v48 = vadd.f32 %v797_v44, %v1256_v5  ;;  %v798_v18 = vadd.f32 %v795_v47, %v782_v45 }
 0x398   : > { %v801_v49 = vmin.f32 %v799_v48, 20.0  ;;  %v800_v50 = vadd.f32 %v798_v18, %v1258_v6 }
 0x39a   : > { %v803_v51 = vmul.f32 1.442695, %v801_v49  ;;  %v802_v52 = vmin.f32 %v800_v50, 20.0 }
 0x39c   : > { %1113 = vpow2.f32 %v803_v51  ;;  %v805_v53 = vmul.f32 1.442695, %v802_v52 }
 0x39e   : > { %1115 = vpow2.f32 %v805_v53 }
 0x3a6   : > { %v1114_v54 = vpop.eup %1113 }
 0x3a7   : > { %v807_v55 = vadd.f32 2.0, %v1114_v54 }
 0x3a8   : > { %v1116_v56 = vpop.eup %1115 }
 0x3a9   : > { %v809_v57 = vmul.f32 %v1114_v54, %v807_v55  ;;  %v808_v58 = vadd.f32 2.0, %v1116_v56 }
 0x3ab   : > { %v813_v59 = vadd.f32 2.0, %v809_v57  ;;  %v810_v60 = vmul.f32 %v1116_v56, %v808_v58  ;;  %v811_v5 = vmul.f32 %v809_v57, %v799_v48 }
 0x3ad   : > { %1117 = vrcp.f32 %v813_v59  ;;  %v814_v61 = vadd.f32 2.0, %v810_v60  ;;  %v812_v6 = vmul.f32 %v810_v60, %v800_v50 }
 0x3af   : > { %1119 = vrcp.f32 %v814_v61 }
 0x3b6   : > { %827 = sbr.rel (!%p1230_p5) target bundleno = 965 (0x3c5), region = 94 }
 0x3b7   : > { %v1118_v62 = vpop.eup %1117 }
 0x3b8   : > { %v817_v63 = vmul.f32 %v1118_v62, %v811_v5 }
 0x3b9   : > { %v1120_v0 = vpop.eup %1119 }
 0x3ba   : > { %819 = vst [vmem:[%s337_s27] sm:$0xff] %v817_v63  ;;  %v818_v1 = vmul.f32 %v1120_v0, %v812_v6 }
 0x3bc   : > { %820 = vst [vmem:[%s337_s27 + $0x8] sm:$0xff] %v818_v1 }
 0x3c1   : > { %v859_v2 = vld [vmem:[%s337_s27] sm:$0xff] }
 0x3c2   : > { %860 = vst [vmem:[%s829_s18] sm:$0xff] %v859_v2 }
 0x3c3   : > { %v861_v3 = vld [vmem:[%s337_s27 + $0x8] sm:$0xff] }
 0x3c4   : > { %862 = vst [vmem:[%s829_s18 + $0x20] sm:$0xff] %v861_v3 }
 0x3c5 PF: > { %p15_p10 = scmp.ge.s32.totalorder %s1217_s9, 6   ;;  %s1389_s27 = smov %s1139_s28 }
 0x3c6   : > { %s1390_s28 = smov %s1228_s12  ;;  %s1391_s29 = smov %s1217_s9 }
 0x3c7   :  { %17 = sbr.rel (!%p15_p10) target bundleno = 2 (0x2), region = 163 }

</bundles_post_ra>
